<compile_context>
chip_gen: v6e
topology: v6e:2x2x1
jax: 0.10.0
libtpu: 0.0.40
codegen_flags: <defaults>
</compile_context>

<pallas_src>
import functools
import math

import jax
import jax.numpy as jnp
import numpy as np
from jax.experimental import pallas as pl
from jax.experimental.pallas import tpu as pltpu

# Matmul operand dtype.  f32 for exactness at these tiny shapes; switch to
# jnp.bfloat16 (and store bf16 weights in HBM) on v6e/v7x at larger H.
MM_DTYPE = jnp.float32


# ------------------------- fused whole-network kernel -------------------------
def _make_fused_kernel(S, B, BP, H, L, only_t0):
    """Builds the kernel body for static (S, B, padded-batch BP, H, L, mode)."""

    def mm(a, w):
        return jnp.dot(a.astype(MM_DTYPE), w.astype(MM_DTYPE),
                       preferred_element_type=jnp.float32)

    def kernel(ids_ref, emb_ref, wih_ref, whh_ref, bx_ref, bhn_ref,
               lw_ref, lb_ref, out_ref, seq_ref):
        # ids_ref: (S*B,)   int32 token ids in SMEM (row-major (t, b))
        # emb_ref: (V, H)   embedding table (VMEM)
        # wih_ref: (L, H, 3H) fused input-projection weights, gate order [r|z|n]
        # whh_ref: (L, H, 3H) fused hidden-projection weights
        # bx_ref:  (L, 1, 3H) folded biases [b_ir+b_hr | b_iz+b_hz | b_in]
        # bhn_ref: (L, 1, H)  b_hn (stays inside the r * (...) term)
        # lw_ref:  (H, O)     Linear weight (transposed); lb_ref: (1, O)
        # out_ref: (B, O)     sigmoid(Linear(out[0]))
        # seq_ref: VMEM staging buffer ((BP,H) fast path, (S*BP,H) full path)

        def head(h_top):
            logits = mm(h_top, lw_ref[...]) + lb_ref[...]
            out_ref[...] = jax.nn.sigmoid(logits).astype(out_ref.dtype)

        def gru_cell(gi_t, h, whh, bhn):
            # gi_t already holds x@Wih + folded biases; only h@Whh is serial.
            gh = mm(h, whh)
            r = jax.nn.sigmoid(gi_t[:, 0:H] + gh[:, 0:H])
            z = jax.nn.sigmoid(gi_t[:, H:2 * H] + gh[:, H:2 * H])
            n = jnp.tanh(gi_t[:, 2 * H:] + r * (gh[:, 2 * H:] + bhn))
            return (1.0 - z) * n + z * h

        if only_t0:
            # ---------------- fast path (default) ----------------
            # Correct for this module because only out[0,:,:] is consumed and
            # its dependence chain touches only t=0 of every layer with
            # h_0 == 0  =>  W_hh @ h_0 == 0 (no hidden-state matmul at all).
            for b in range(B):                        # in-kernel gather, t = 0 ids
                seq_ref[b:b + 1, :] = emb_ref[pl.ds(ids_ref[b], 1), :]
            x = seq_ref[0:B, :]
            for l in range(L):
                gi = mm(x, wih_ref[l]) + bx_ref[l]               # (B, 3H)
                r = jax.nn.sigmoid(gi[:, 0:H])
                z = jax.nn.sigmoid(gi[:, H:2 * H])
                n = jnp.tanh(gi[:, 2 * H:] + r * bhn_ref[l])     # gh == 0
                x = (1.0 - z) * n                                # + z*h, h == 0
            head(x)
        else:
            # ------------- general full-sequence path -------------
            # Batch rows live in a BP-padded sublane tile so every per-timestep
            # access on the serial chain is (8,*)-aligned.
            seq_ref[...] = jnp.zeros((S * BP, H), jnp.float32)   # zero pad rows
            for t in range(S):                        # in-kernel embedding gather
                for b in range(B):
                    seq_ref[t * BP + b:t * BP + b + 1, :] = (
                        emb_ref[pl.ds(ids_ref[t * B + b], 1), :])

            # Layers 0 .. L-2: full sequence.  Whole-sequence input projection
            # hoisted out of the recurrence; only h@Whh is per-timestep work.
            for l in range(L - 1):
                gi = mm(seq_ref[...], wih_ref[l]) + bx_ref[l]    # (S*BP, 3H)
                whh = whh_ref[l].astype(MM_DTYPE)                # once per layer
                bhn = pl.broadcast_to(bhn_ref[l], (BP, H))       # hoisted broadcast
                h = jnp.zeros((BP, H), jnp.float32)
                for t in range(S):                               # static unroll
                    h = gru_cell(gi[t * BP:(t + 1) * BP, :], h, whh, bhn)
                    seq_ref[t * BP:(t + 1) * BP, :] = h          # aligned (8,H) store

            # Last layer: downstream consumes only out[0] -> one timestep.
            l = L - 1
            gi0 = mm(seq_ref[0:BP, :], wih_ref[l]) + bx_ref[l]
            h0 = gru_cell(gi0, jnp.zeros((BP, H), jnp.float32),
                          whh_ref[l].astype(MM_DTYPE),
                          pl.broadcast_to(bhn_ref[l], (BP, H)))
            head(h0[0:B, :])

    return kernel


def gru_forward(input_seq, params, *, only_t0=True):
    """Matches GRU.forward: emb -> num_layers GRU -> out[0] -> Linear -> Sigmoid.

    input_seq: (S, B) int32 token ids (time-major, batch_first=False).
    Returns (B, output_size) float32 scores.
    """
    S, B = input_seq.shape
    _, H = params["emb"].shape
    O = params["lin_w_t"].shape[1]
    L = params["wih"].shape[0]
    BP = ((B + 7) // 8) * 8                      # sublane-aligned padded batch
    ids_flat = input_seq.reshape(-1).astype(jnp.int32)   # (S*B,) -> SMEM

    kernel = _make_fused_kernel(S, B, BP, H, L, only_t0)
    scratch_rows = BP if only_t0 else S * BP
    vmem = pltpu.MemorySpace.VMEM

    return pl.pallas_call(
        kernel,
        out_shape=jax.ShapeDtypeStruct((B, O), jnp.float32),
        in_specs=[pl.BlockSpec(memory_space=pltpu.MemorySpace.SMEM)]   # ids
                 + [pl.BlockSpec(memory_space=vmem)] * 7,              # table/weights
        out_specs=pl.BlockSpec(memory_space=vmem),
        scratch_shapes=[pltpu.VMEM((scratch_rows, H), jnp.float32)],
        compiler_params=pltpu.CompilerParams(vmem_limit_bytes=32 * 1024 * 1024),
    )(ids_flat, params["emb"], params["wih"], params["whh"], params["bx"],
      params["bhn"], params["lin_w_t"], params["lin_b"])


# ------------------------------ JAX reference --------------------------------
def gru_forward_ref(input_seq, params):
    """Literal PyTorch-formula reference (full sequence, unfolded biases)."""
    H = params["emb"].shape[1]
    embeds = params["emb"][input_seq]                # (S, B, H)
    B = embeds.shape[1]
    h_seq = embeds
    for (wihT, whhT, bih, bhh) in params["ref_layers"]:
        def step(h, x, wihT=wihT, whhT=whhT, bih=bih, bhh=bhh):
            gi = x @ wihT + bih[None, :]
            gh = h @ whhT + bhh[None, :]
            r = jax.nn.sigmoid(gi[:, :H] + gh[:, :H])
            z = jax.nn.sigmoid(gi[:, H:2 * H] + gh[:, H:2 * H])
            n = jnp.tanh(gi[:, 2 * H:] + r * gh[:, 2 * H:])
            h_new = (1.0 - z) * n + z * h
            return h_new, h_new

        _, h_seq = jax.lax.scan(step, jnp.zeros((B, H), jnp.float32), h_seq)
    out0 = h_seq[0]
    return jax.nn.sigmoid(out0 @ params["lin_w_t"] + params["lin_b"])


# --------------------------------- Setup -------------------------------------
def init_params(key, vocab_size, hidden_size, output_size, num_layers):
    H = hidden_size
    ks = iter(jax.random.split(key, 1 + 4 * num_layers + 2))
    k = 1.0 / math.sqrt(H)

    emb = jax.random.normal(next(ks), (vocab_size, H), jnp.float32)

    wih_s, whh_s, bx_s, bhn_s, ref_layers = [], [], [], [], []
    for _ in range(num_layers):
        # PyTorch layout: weight_ih (3H, H_in), weight_hh (3H, H), gates [r,z,n].
        wih = jax.random.uniform(next(ks), (3 * H, H), jnp.float32, -k, k)
        whh = jax.random.uniform(next(ks), (3 * H, H), jnp.float32, -k, k)
        bih = jax.random.uniform(next(ks), (3 * H,), jnp.float32, -k, k)
        bhh = jax.random.uniform(next(ks), (3 * H,), jnp.float32, -k, k)

        wihT = wih.T                      # (H_in, 3H)
        whhT = whh.T                      # (H, 3H)
        # Fold r/z input+hidden biases; b_hn stays separate because it must
        # sit inside the r * (...) term of the n gate.
        bx = jnp.concatenate([bih[:H] + bhh[:H],
                              bih[H:2 * H] + bhh[H:2 * H],
                              bih[2 * H:]])
        wih_s.append(wihT)
        whh_s.append(whhT)
        bx_s.append(bx.reshape(1, 3 * H))
        bhn_s.append(bhh[2 * H:].reshape(1, H))
        ref_layers.append((wihT, whhT, bih, bhh))

    lin_w = jax.random.uniform(next(ks), (output_size, H), jnp.float32, -k, k)
    lin_b = jax.random.uniform(next(ks), (output_size,), jnp.float32, -k, k)

    return {
        "emb": emb,
        "wih": jnp.stack(wih_s),          # (L, H, 3H)
        "whh": jnp.stack(whh_s),          # (L, H, 3H)
        "bx": jnp.stack(bx_s),            # (L, 1, 3H)
        "bhn": jnp.stack(bhn_s),          # (L, 1, H)
        "lin_w_t": lin_w.T,               # (H, O)
        "lin_b": lin_b.reshape(1, output_size),
        "ref_layers": ref_layers,         # raw weights for the pure-JAX reference
    }


if __name__ == "__main__":
    vocab_size, hidden_size, output_size, num_layers = 50, 32, 8, 2
    seq_len, batch = 8, 2

    k_params, k_inp = jax.random.split(jax.random.PRNGKey(0))
    params = init_params(k_params, vocab_size, hidden_size, output_size, num_layers)
    input_seq = jax.random.randint(k_inp, (seq_len, batch), 0, vocab_size,
                                   dtype=jnp.int32)

    ref = np.asarray(jax.block_until_ready(gru_forward_ref(input_seq, params)))

    fwd_fast = jax.jit(functools.partial(gru_forward, only_t0=True))   # default
    fwd_full = jax.jit(functools.partial(gru_forward, only_t0=False))  # general path

    out_fast = np.asarray(jax.block_until_ready(fwd_fast(input_seq, params)))
    out_full = np.asarray(jax.block_until_ready(fwd_full(input_seq, params)))

    assert out_fast.shape == (batch, output_size), out_fast.shape
    tol = 1e-5 if MM_DTYPE == jnp.float32 else 2e-2
    np.testing.assert_allclose(out_fast, ref, rtol=tol, atol=tol)
    np.testing.assert_allclose(out_full, ref, rtol=tol, atol=tol)
    print("KERNEL_OK")
</pallas_src>

<mosaic_0001>
module attributes {stable_mosaic.version = 11 : i64} {
  func.func @kernel(%arg0: memref<16xi32, #tpu.memory_space<smem>>, %arg1: memref<50x32xf32, #tpu.memory_space<vmem>>, %arg2: memref<2x32x96xf32, #tpu.memory_space<vmem>>, %arg3: memref<2x32x96xf32, #tpu.memory_space<vmem>>, %arg4: memref<2x1x96xf32, #tpu.memory_space<vmem>>, %arg5: memref<2x1x32xf32, #tpu.memory_space<vmem>>, %arg6: memref<32x8xf32, #tpu.memory_space<vmem>>, %arg7: memref<1x8xf32, #tpu.memory_space<vmem>>, %arg8: memref<2x8xf32, #tpu.memory_space<vmem>>, %arg9: memref<8x32xf32, #tpu.memory_space<vmem>>) attributes {dimension_semantics = [], scalar_prefetch = 0 : i64, scratch_operands = 1 : i64, tpu.core_type = #tpu.core_type<tc>} {
    %c0 = arith.constant 0 : index
    %0 = memref.load %arg0[%c0] : memref<16xi32, #tpu.memory_space<smem>>
    %1 = arith.index_cast %0 : i32 to index
    %c0_0 = arith.constant 0 : index
    %2 = vector.load %arg1[%1, %c0_0] : memref<50x32xf32, #tpu.memory_space<vmem>>, vector<1x32xf32>
    %c0_1 = arith.constant 0 : index
    %c0_2 = arith.constant 0 : index
    %3 = vector.load %arg9[%c0_1, %c0_2] : memref<8x32xf32, #tpu.memory_space<vmem>>, vector<1x32xf32>
    tpu.vector_store %arg9[%c0_1, %c0_2], %2 {strides = array<i32>} : memref<8x32xf32, #tpu.memory_space<vmem>>, vector<1x32xf32>,
    %c1 = arith.constant 1 : index
    %4 = memref.load %arg0[%c1] : memref<16xi32, #tpu.memory_space<smem>>
    %5 = arith.index_cast %4 : i32 to index
    %c0_3 = arith.constant 0 : index
    %6 = vector.load %arg1[%5, %c0_3] : memref<50x32xf32, #tpu.memory_space<vmem>>, vector<1x32xf32>
    %c1_4 = arith.constant 1 : index
    %c0_5 = arith.constant 0 : index
    %7 = vector.load %arg9[%c1_4, %c0_5] : memref<8x32xf32, #tpu.memory_space<vmem>>, vector<1x32xf32>
    tpu.vector_store %arg9[%c1_4, %c0_5], %6 {strides = array<i32>} : memref<8x32xf32, #tpu.memory_space<vmem>>, vector<1x32xf32>,
    %c0_6 = arith.constant 0 : index
    %c0_7 = arith.constant 0 : index
    %8 = vector.load %arg9[%c0_6, %c0_7] : memref<8x32xf32, #tpu.memory_space<vmem>>, vector<2x32xf32>
    %c0_8 = arith.constant 0 : index
    %c0_9 = arith.constant 0 : index
    %c0_10 = arith.constant 0 : index
    %9 = vector.load %arg2[%c0_8, %c0_9, %c0_10] : memref<2x32x96xf32, #tpu.memory_space<vmem>>, vector<1x32x96xf32>
    %10 = vector.shape_cast %9 : vector<1x32x96xf32> to vector<32x96xf32>
    %cst = arith.constant dense<0.000000e+00> : vector<2x96xf32>
    %11 = tpu.matmul %8, %10, %cst {dimension_numbers = #tpu.dot_dimension_numbers<[1], [0], [0], [1], [0, 0, 1, 1], [], []>} : vector<2x32xf32>, vector<32x96xf32>, vector<2x96xf32> -> vector<2x96xf32>
    %c0_11 = arith.constant 0 : index
    %c0_12 = arith.constant 0 : index
    %c0_13 = arith.constant 0 : index
    %12 = vector.load %arg4[%c0_11, %c0_12, %c0_13] : memref<2x1x96xf32, #tpu.memory_space<vmem>>, vector<1x1x96xf32>
    %13 = vector.shape_cast %12 : vector<1x1x96xf32> to vector<1x96xf32>
    %14 = vector.broadcast %13 : vector<1x96xf32> to vector<2x96xf32>
    %15 = arith.addf %11, %14 : vector<2x96xf32>
    %16 = vector.extract_strided_slice %15 {offsets = [0, 0], sizes = [2, 32], strides = [1, 1]} : vector<2x96xf32> to vector<2x32xf32>
    %17 = arith.negf %16 : vector<2x32xf32>
    %18 = math.exp %17 : vector<2x32xf32>
    %cst_14 = arith.constant 1.000000e+00 : f32
    %19 = vector.broadcast %cst_14 : f32 to vector<2x32xf32>
    %20 = arith.addf %19, %18 : vector<2x32xf32>
    %21 = arith.divf %19, %20 : vector<2x32xf32>
    %22 = vector.extract_strided_slice %15 {offsets = [0, 32], sizes = [2, 32], strides = [1, 1]} : vector<2x96xf32> to vector<2x32xf32>
    %23 = arith.negf %22 : vector<2x32xf32>
    %24 = math.exp %23 : vector<2x32xf32>
    %cst_15 = arith.constant 1.000000e+00 : f32
    %25 = vector.broadcast %cst_15 : f32 to vector<2x32xf32>
    %26 = arith.addf %25, %24 : vector<2x32xf32>
    %27 = arith.divf %25, %26 : vector<2x32xf32>
    %28 = vector.extract_strided_slice %15 {offsets = [0, 64], sizes = [2, 32], strides = [1, 1]} : vector<2x96xf32> to vector<2x32xf32>
    %c0_16 = arith.constant 0 : index
    %c0_17 = arith.constant 0 : index
    %c0_18 = arith.constant 0 : index
    %29 = vector.load %arg5[%c0_16, %c0_17, %c0_18] : memref<2x1x32xf32, #tpu.memory_space<vmem>>, vector<1x1x32xf32>
    %30 = vector.shape_cast %29 : vector<1x1x32xf32> to vector<1x32xf32>
    %31 = vector.broadcast %30 : vector<1x32xf32> to vector<2x32xf32>
    %32 = arith.mulf %21, %31 : vector<2x32xf32>
    %33 = arith.addf %28, %32 : vector<2x32xf32>
    %34 = math.tanh %33 : vector<2x32xf32>
    %cst_19 = arith.constant 1.000000e+00 : f32
    %35 = vector.broadcast %cst_19 : f32 to vector<2x32xf32>
    %36 = arith.subf %35, %27 : vector<2x32xf32>
    %37 = arith.mulf %36, %34 : vector<2x32xf32>
    %c1_20 = arith.constant 1 : index
    %c0_21 = arith.constant 0 : index
    %c0_22 = arith.constant 0 : index
    %38 = vector.load %arg2[%c1_20, %c0_21, %c0_22] : memref<2x32x96xf32, #tpu.memory_space<vmem>>, vector<1x32x96xf32>
    %39 = vector.shape_cast %38 : vector<1x32x96xf32> to vector<32x96xf32>
    %cst_23 = arith.constant dense<0.000000e+00> : vector<2x96xf32>
    %40 = tpu.matmul %37, %39, %cst_23 {dimension_numbers = #tpu.dot_dimension_numbers<[1], [0], [0], [1], [0, 0, 1, 1], [], []>} : vector<2x32xf32>, vector<32x96xf32>, vector<2x96xf32> -> vector<2x96xf32>
    %c1_24 = arith.constant 1 : index
    %c0_25 = arith.constant 0 : index
    %c0_26 = arith.constant 0 : index
    %41 = vector.load %arg4[%c1_24, %c0_25, %c0_26] : memref<2x1x96xf32, #tpu.memory_space<vmem>>, vector<1x1x96xf32>
    %42 = vector.shape_cast %41 : vector<1x1x96xf32> to vector<1x96xf32>
    %43 = vector.broadcast %42 : vector<1x96xf32> to vector<2x96xf32>
    %44 = arith.addf %40, %43 : vector<2x96xf32>
    %45 = vector.extract_strided_slice %44 {offsets = [0, 0], sizes = [2, 32], strides = [1, 1]} : vector<2x96xf32> to vector<2x32xf32>
    %46 = arith.negf %45 : vector<2x32xf32>
    %47 = math.exp %46 : vector<2x32xf32>
    %cst_27 = arith.constant 1.000000e+00 : f32
    %48 = vector.broadcast %cst_27 : f32 to vector<2x32xf32>
    %49 = arith.addf %48, %47 : vector<2x32xf32>
    %50 = arith.divf %48, %49 : vector<2x32xf32>
    %51 = vector.extract_strided_slice %44 {offsets = [0, 32], sizes = [2, 32], strides = [1, 1]} : vector<2x96xf32> to vector<2x32xf32>
    %52 = arith.negf %51 : vector<2x32xf32>
    %53 = math.exp %52 : vector<2x32xf32>
    %cst_28 = arith.constant 1.000000e+00 : f32
    %54 = vector.broadcast %cst_28 : f32 to vector<2x32xf32>
    %55 = arith.addf %54, %53 : vector<2x32xf32>
    %56 = arith.divf %54, %55 : vector<2x32xf32>
    %57 = vector.extract_strided_slice %44 {offsets = [0, 64], sizes = [2, 32], strides = [1, 1]} : vector<2x96xf32> to vector<2x32xf32>
    %c1_29 = arith.constant 1 : index
    %c0_30 = arith.constant 0 : index
    %c0_31 = arith.constant 0 : index
    %58 = vector.load %arg5[%c1_29, %c0_30, %c0_31] : memref<2x1x32xf32, #tpu.memory_space<vmem>>, vector<1x1x32xf32>
    %59 = vector.shape_cast %58 : vector<1x1x32xf32> to vector<1x32xf32>
    %60 = vector.broadcast %59 : vector<1x32xf32> to vector<2x32xf32>
    %61 = arith.mulf %50, %60 : vector<2x32xf32>
    %62 = arith.addf %57, %61 : vector<2x32xf32>
    %63 = math.tanh %62 : vector<2x32xf32>
    %cst_32 = arith.constant 1.000000e+00 : f32
    %64 = vector.broadcast %cst_32 : f32 to vector<2x32xf32>
    %65 = arith.subf %64, %56 : vector<2x32xf32>
    %66 = arith.mulf %65, %63 : vector<2x32xf32>
    %c0_33 = arith.constant 0 : index
    %c0_34 = arith.constant 0 : index
    %67 = vector.load %arg6[%c0_33, %c0_34] : memref<32x8xf32, #tpu.memory_space<vmem>>, vector<32x8xf32>
    %cst_35 = arith.constant dense<0.000000e+00> : vector<2x8xf32>
    %68 = tpu.matmul %66, %67, %cst_35 {dimension_numbers = #tpu.dot_dimension_numbers<[1], [0], [0], [1], [0, 0, 1, 1], [], []>} : vector<2x32xf32>, vector<32x8xf32>, vector<2x8xf32> -> vector<2x8xf32>
    %c0_36 = arith.constant 0 : index
    %c0_37 = arith.constant 0 : index
    %69 = vector.load %arg7[%c0_36, %c0_37] : memref<1x8xf32, #tpu.memory_space<vmem>>, vector<1x8xf32>
    %70 = vector.broadcast %69 : vector<1x8xf32> to vector<2x8xf32>
    %71 = arith.addf %68, %70 : vector<2x8xf32>
    %72 = arith.negf %71 : vector<2x8xf32>
    %73 = math.exp %72 : vector<2x8xf32>
    %cst_38 = arith.constant 1.000000e+00 : f32
    %74 = vector.broadcast %cst_38 : f32 to vector<2x8xf32>
    %75 = arith.addf %74, %73 : vector<2x8xf32>
    %76 = arith.divf %74, %75 : vector<2x8xf32>
    %c0_39 = arith.constant 0 : index
    %c0_40 = arith.constant 0 : index
    %77 = vector.load %arg8[%c0_39, %c0_40] : memref<2x8xf32, #tpu.memory_space<vmem>>, vector<2x8xf32>
    tpu.vector_store %arg8[%c0_39, %c0_40], %76 {strides = array<i32>} : memref<2x8xf32, #tpu.memory_space<vmem>>, vector<2x8xf32>,
    return
  }
}

</mosaic_0001>

<bundles_post_ra>
// kernel: gru_forward.1
= control target key start
LH: loop header
LB: loop body
LE: loop exit
PB: predicated region body
PF: predicated region fallthrough
CT: control target
= control target key end

     0   :  { %13 = vsyncpa [#allocation5], 0  ;;  %s655_s0 = inlined_call_operand.vmem [shape: s32[16], index: 0, kind: input, shape index: {}]   ;;  %s656_s1 = inlined_call_operand.vmem [shape: f32[50,32], index: 1, kind: input, shape index: {}]   ;;  %s657_s2 = inlined_call_operand.vmem [shape: f32[2,32,96], index: 2, kind: input, shape index: {}]   ;;  %s658_s3 = inlined_call_operand.vmem [shape: f32[2,32,96], index: 3, kind: input, shape index: {}]   ;;  %s659_s4 = inlined_call_operand.vmem [shape: f32[2,1,96], index: 4, kind: input, shape index: {}]   ;;  %s660_s5 = inlined_call_operand.vmem [shape: f32[2,1,32], index: 5, kind: input, shape index: {}]   ;;  %s661_s6 = inlined_call_operand.vmem [shape: f32[32,8], index: 6, kind: input, shape index: {}]   ;;  %s662_s7 = inlined_call_operand.vmem [shape: f32[1,8], index: 7, kind: input, shape index: {}]   ;;  %s663_s8 = inlined_call_operand.hbm [shape: f32[2,8], index: 8, kind: output, shape index: {}]  }
   0x1   :  { %14 = vsyncpa [#allocation4], 0  ;;  %s21_s3 = sshll.u32 %s655_s0, 4  ;;  %s22_s3 = int_to_ptr.vmem [resolvable:$true] %s21_s3 }
   0x2   :  { %s478_s29 = scalar_lea.vmem %s22_s3, 16  ;;  %p483_p1 = scmp.lt.s32.totalorder %s22_s3, %s22_s3 }
   0x3   :  { %p479_p0 = scmp.ne.s32.totalorder %s22_s3, %s478_s29  ;;  %p484_p2 = scmp.lt.s32.totalorder %s478_s29, %s478_s29 }
   0x5   :  { %p485_p3 = por %p484_p2, %p483_p1 }
   0x7   :  { %p486_p4 = pnand %p485_p3, %p479_p0 }
   0x9   :  { %489 = shalt.err (!%p486_p4)
}
   0xa   :  { %s514_s30 = smov [#allocation3]  }
   0xb   :  { %24 = dma.vmem_to_smem %s22_s3, 16, %s514_s30, [#allocation5]  }
   0xc   :  { %510 = dma.done.wait [#allocation5], 16  }
   0xd   :  { %511 = vsyncadd [#allocation5], 4294967280 }
   0xe   :  { %42 = sfence }
   0xf   :  { %v56_v0 = vld [vmem:[%s657_s2 + $0x18] sm:$0xff]  ;;  %v515_v1 = vmov 0.0   ;;  %v55_v2 = vld [vmem:[%s657_s2 + $0x10] sm:$0xff]  ;;  %vm516_vm0 = vmmov 0   ;;  %s43_s12 = sld [smem:[#allocation3]]  ;;  %v54_v3 = vld [vmem:[%s657_s2 + $0x8] sm:$0xff] }
  0x10   :  { %423 = vmatprep.subr.mxu0 %v515_v1  ;;  %431 = vmatprep.mubr.msk.f32.mxu0 %vm516_vm0, %v515_v1  ;;  %s390_s13 = sld [smem:[#allocation3 + $0x1]]  ;;  %v53_v4 = vld [vmem:[%s657_s2] sm:$0xff]  ;;  %vm46_vm1 = vcmask 253952   ;;  %vm64_vm2 = vcmask 261120   ;;  %s517_s27 = smov 64   ;;  %v398_v20 = vld [vmem:[%s657_s2 + $0x38] sm:$0xff] }
  0x11   :  { %424 = vmatpush3.msra.mxu0 %v56_v0  ;;  %434 = vmatprep.subr.mxu1 %v515_v1  ;;  %v391_v8 = vld [vmem:[%s659_s4] ss:$0 sm:$0xff]  ;;  %v397_v21 = vld [vmem:[%s657_s2 + $0x30] sm:$0xff]  ;;  %v396_v22 = vld [vmem:[%s657_s2 + $0x28] sm:$0xff]  ;;  %vm371_vm3 = vcmask 58368  }
  0x12   :  { %425 = vmatprep.subr.mxu0 %v515_v1  ;;  %442 = vmatprep.mubr.msk.f32.mxu1 %vm516_vm0, %v515_v1  ;;  %v394_v15 = vld [vmem:[%s660_s5] ss:$0 sm:$0xff]  ;;  %v400_v29 = vld [vmem:[%s659_s4 + $0x1] ss:$0 sm:$0xff]  ;;  %v282_v41 = vld [vmem:[%s661_s6 + $0x18] sm:$0xff] }
  0x13   :  { %426 = vmatpush3.msra.mxu0 %v55_v2  ;;  %435 = vmatpush3.msra.mxu1 %v398_v20  ;;  %v395_v23 = vld [vmem:[%s657_s2 + $0x20] sm:$0xff]  ;;  %v281_v42 = vld [vmem:[%s661_s6 + $0x10] sm:$0xff]  ;;  %v280_v43 = vld [vmem:[%s661_s6 + $0x8] sm:$0xff] }
  0x14   :  { %427 = vmatprep.subr.mxu0 %v515_v1  ;;  %436 = vmatprep.subr.mxu1 %v515_v1  ;;  %v404_v36 = vld [vmem:[%s660_s5 + $0x1] ss:$0 sm:$0xff]  ;;  %v405_v50 = vld [vmem:[%s662_s7] ss:$0 sm:$0xff] }
  0x15   :  { %428 = vmatpush3.msra.mxu0 %v54_v3  ;;  %s44_s20 = scalar_lea.vmem %s656_s1, %s43_s12  ;;  %437 = vmatpush3.msra.mxu1 %v397_v21  ;;  %s518_s12 = smov 96   ;;  %v279_v44 = vld [vmem:[%s661_s6] sm:$0xff] }
  0x16   :  { %429 = vmatprep.subr.mxu0 %v515_v1  ;;  %v45_v5 = vld [vmem:[%s44_s20] sm:$0x1]  ;;  %s49_s23 = scalar_lea.vmem %s656_s1, %s390_s13  ;;  %438 = vmatprep.subr.mxu1 %v515_v1  ;;  %s519_s6 = smov [#allocation6]  }
  0x17   :  { %430 = vmatpush3.msra.mxu0 %v53_v4  ;;  %47 = vst.msk [vmem:[#allocation2] sm:$0x1] %vm46_vm1, %v45_v5  ;;  %v50_v6 = vld [vmem:[%s49_s23] sm:$0x1]  ;;  %439 = vmatpush3.msra.mxu1 %v396_v22  ;;  %s379_s24 = sshll.u32 %s519_s6, 4  ;;  %s380_s24 = int_to_ptr.vmem [resolvable:$true] %s379_s24 }
  0x18   :  { %445 = vmatprep.subr.mxu0 %v515_v1  ;;  %51 = vst.msk [vmem:[#allocation2 + $0x1] sm:$0x1] %vm46_vm1, %v50_v6  ;;  %440 = vmatprep.subr.mxu1 %v515_v1  ;;  %s490_s25 = scalar_lea.vmem %s380_s24, 32  ;;  %p495_p6 = scmp.lt.s32.totalorder %s380_s24, %s380_s24 }
  0x19   :  { %441 = vmatpush3.msra.mxu1 %v395_v23  ;;  %p491_p5 = scmp.ne.s32.totalorder %s380_s24, %s490_s25  ;;  %p496_p7 = scmp.lt.s32.totalorder %s490_s25, %s490_s25 }
  0x1b   :  { %p497_p8 = por %p496_p7, %p495_p6 }
  0x1d   :  { %p498_p9 = pnand %p497_p8, %p491_p5 }
  0x1f   :  { %v52_v7 = vld [vmem:[#allocation2] sm:$0x3] }
  0x20   :  { %432 = vmatmul.mubr.msk.f32.vlgmr.msra.gmra.mxu0 %vm64_vm2, %v52_v7 }
  0x21   :  { %453 = vmatprep.mubr.msk.f32.mxu0 %vm516_vm0, %v515_v1  ;;  %446 = vmatpush3.msra.mxu0 %v282_v41 }
  0x22   :  { %447 = vmatprep.subr.mxu0 %v515_v1 }
  0x23   :  { %448 = vmatpush3.msra.mxu0 %v281_v42 }
  0x24   :  { %449 = vmatprep.subr.mxu0 %v515_v1 }
  0x25   :  { %450 = vmatpush3.msra.mxu0 %v280_v43 }
  0x26   :  { %451 = vmatprep.subr.mxu0 %v515_v1 }
  0x27   :  { %452 = vmatpush3.msra.mxu0 %v279_v44 }
  0xe0   :  { %v134_v9 = vpop.f32.mrf.mxu0 }
  0xe1   :  { %v135_v10 = vadd.f32 %v391_v8, %v134_v9 }
  0xe2   :  { %v433_v11 = vpop.f32.mrf.mxu0 }
  0xe3   :  { %v393_v12 = vmul.f32 -1.442695, %v135_v10 }
  0xe5   :  { %462 = vpow2.f32 %v393_v12 }
  0xf2   :  { %v463_v13 = vpop.eup %462 }
  0xf3   :  { %v141_v14 = vadd.f32 1.0, %v463_v13 }
  0xf5   :  { %464 = vrcp.f32 %v141_v14 }
 0x102   :  { %v465_v16 = vpop.eup %464 }
 0x103   :  { %v151_v17 = vmul.f32 %v465_v16, %v394_v15  ;;  %v158_v25 = vsub.f32 1.0, %v465_v16 }
 0x105   :  { %153 = vrot.lane.b32.xlu0 %v151_v17, %s517_s27 }
 0x177   :  { %v154_v18 = vpop.permute.xlu0 %153 }
 0x178   :  { %v156_v19 = vadd.f32 %v154_v18, %v135_v10 }
 0x17a   :  { %466 = vtanh.f32 %v156_v19 }
 0x187   :  { %v467_v24 = vpop.eup %466 }
 0x188   :  { %160 = vrot.lane.b32.xlu0 %v467_v24, %s518_s12 }
 0x1fa   :  { %v161_v26 = vpop.permute.xlu0 %160 }
 0x1fb   :  { %v163_v27 = vmul.f32 %v161_v26, %v158_v25 }
 0x1fd   :  { %178 = vrot.lane.b32.xlu1 %v163_v27, %s518_s12 }
 0x26f   :  { %v179_v28 = vpop.permute.xlu1 %178 }
 0x270   :  { %443 = vmatmul.mubr.msk.f32.vlgmr.msra.gmra.mxu1 %vm64_vm2, %v179_v28 }
 0x330   :  { %v248_v30 = vpop.f32.mrf.mxu1 }
 0x331   :  { %v249_v31 = vadd.f32 %v400_v29, %v248_v30 }
 0x332   :  { %v444_v32 = vpop.f32.mrf.mxu1 }
 0x333   :  { %v402_v33 = vmul.f32 -1.442695, %v249_v31 }
 0x335   :  { %468 = vpow2.f32 %v402_v33 }
 0x342   :  { %v469_v34 = vpop.eup %468 }
 0x343   :  { %v255_v35 = vadd.f32 1.0, %v469_v34 }
 0x345   :  { %470 = vrcp.f32 %v255_v35 }
 0x352   :  { %v471_v37 = vpop.eup %470 }
 0x353   :  { %v266_v38 = vmul.f32 %v471_v37, %v404_v36  ;;  %v273_v46 = vsub.f32 1.0, %v471_v37 }
 0x355   :  { %268 = vrot.lane.b32.xlu1 %v266_v38, %s517_s27 }
 0x3c7   :  { %v269_v39 = vpop.permute.xlu1 %268 }
 0x3c8   :  { %v271_v40 = vadd.f32 %v269_v39, %v249_v31 }
 0x3ca   :  { %472 = vtanh.f32 %v271_v40 }
 0x3d7   :  { %v473_v45 = vpop.eup %472 }
 0x3d8   :  { %275 = vrot.lane.b32.xlu0 %v473_v45, %s518_s12 }
 0x44a   :  { %v276_v47 = vpop.permute.xlu0 %275 }
 0x44b   :  { %v278_v48 = vmul.f32 %v276_v47, %v273_v46 }
 0x44d   :  { %291 = vrot.lane.b32.xlu1 %v278_v48, %s518_s12 }
 0x4bf   :  { %v292_v49 = vpop.permute.xlu1 %291 }
 0x4c0   :  { %454 = vmatmul.mubr.msk.f32.vlgmr.msra.gmra.mxu0 %vm64_vm2, %v292_v49 }
 0x580   :  { %v361_v51 = vpop.f32.mrf.mxu0 }
 0x581   :  { %v362_v52 = vadd.f32 %v405_v50, %v361_v51 }
 0x582   :  { %v455_v53 = vpop.f32.mrf.mxu0 }
 0x583   :  { %v407_v54 = vmul.f32 -1.442695, %v362_v52 }
 0x585   :  { %474 = vpow2.f32 %v407_v54 }
 0x592   :  { %v475_v55 = vpop.eup %474 }
 0x593   :  { %v368_v56 = vadd.f32 1.0, %v475_v55 }
 0x595   :  { %476 = vrcp.f32 %v368_v56 }
 0x5a2   :  { %v477_v57 = vpop.eup %476 }
 0x5a3   :  { %372 = vst.msk [vmem:[#allocation6] sm:$0x3] %vm371_vm3, %v477_v57 }
 0x5a4   :  { %501 = shalt.err (!%p498_p9)
}
 0x5a5   :  { %382 = dma.vmem_to_hbm [thread:$0]  %s380_s24, 32, %s663_s8, [#allocation4]  }
 0x5a6   :  { %512 = dma.done.wait [#allocation4], 32  }
 0x5a7   :  { %513 = vsyncadd [#allocation4], 4294967264 }
 0x5a8   :  { %386 = vsyncpa [#allocation4], 1 }
 0x5a9   :  { %387 = vsyncpa [#allocation5], 1 }

</bundles_post_ra>
